<compile_context>
chip_gen: v5e
topology: v5e:2x2
jax: 0.10.0
libtpu: 0.0.40
codegen_flags: <defaults>
</compile_context>

<pallas_src>
import functools

import jax
import jax.numpy as jnp
from jax.experimental import pallas as pl
from jax.experimental.pallas import tpu as pltpu

LN_EPS = 1e-5  # PyTorch nn.LayerNorm default


def _round_up(x, m):
    return ((x + m - 1) // m) * m


def _max_tile_m():
    """Generation-aware row-tile cap (safe fallback: 512)."""
    try:
        kind = jax.devices()[0].device_kind.lower()
    except Exception:  # pragma: no cover - defensive
        return 512
    if "v5 lite" in kind or "v5e" in kind or "v5lite" in kind:
        # v5e: 1 vector-store slot + ~0.8 TB/s HBM -> keep the f32 LN epilogue
        # accumulator hotter with a smaller tile (kernel is not MXU-bound).
        return 256
    return 512


def _choose_tile_m(M, max_tile):
    """Pick the MXU row tile.

    Produces an even number of grid steps with balanced block sizes so v7x's
    two TensorCores split the work evenly (harmless on 1-TC v5e/v6e). Always a
    multiple of 8 (sublane granularity).
    """
    if M <= 8:
        return 8
    steps = max(2, 2 * pl.cdiv(M, 2 * max_tile))
    return min(max_tile, max(8, _round_up(pl.cdiv(M, steps), 8)))


# ----------------------------------------------------------------------------
# Pallas kernel: fused (im2col-matmul + bias) -> LayerNorm(embed_dim)
# ----------------------------------------------------------------------------
def _patch_embed_kernel(p_ref, w_ref, params_ref, o_ref):
    # p_ref:      (TM, K) bf16 im2col patch rows
    # w_ref:      (K, N)  bf16 reshaped conv weight
    # params_ref: (3, N)  f32  rows = [conv bias, LN gamma, LN beta]
    # o_ref:      (TM, N) out dtype (bf16 by default)
    prm = params_ref[...]
    acc = jnp.dot(p_ref[...], w_ref[...], preferred_element_type=jnp.float32)
    acc = acc + prm[0:1, :]

    # Single-pass LayerNorm over the (real, unpadded) embed_dim.
    # Note: E[x^2] - mean^2 in f32 is slightly less stable than the two-pass
    # form; fine at these activation magnitudes and guarded with max(var, 0).
    inv_n = 1.0 / float(acc.shape[-1])
    s = jnp.sum(acc, axis=-1, keepdims=True)
    s2 = jnp.sum(acc * acc, axis=-1, keepdims=True)
    mean = s * inv_n
    var = jnp.maximum(s2 * inv_n - mean * mean, 0.0)
    xn = (acc - mean) * jax.lax.rsqrt(var + LN_EPS)
    o_ref[...] = (xn * prm[1:2, :] + prm[2:3, :]).astype(o_ref.dtype)


def _fused_proj_norm(patches, w2d, ln_params, *, tile_m, out_dtype):
    M, K = patches.shape
    _, N = w2d.shape
    grid = (pl.cdiv(M, tile_m),)  # boundary block (if any) is write-masked

    # Grid-invariant operands don't need a second pipeline buffer. Only switch
    # it on when the operand is big enough to matter (keeps the tiny-shape
    # path on the default, most-tested configuration).
    big_consts = (w2d.size * w2d.dtype.itemsize) > (1 << 20)
    const_mode = pl.Buffered(1) if big_consts else None

    return pl.pallas_call(
        _patch_embed_kernel,
        out_shape=jax.ShapeDtypeStruct((M, N), out_dtype),
        grid_spec=pltpu.PrefetchScalarGridSpec(
            num_scalar_prefetch=0,
            grid=grid,
            in_specs=[
                # NOTE(v6e): once HBM-bound, sweeping pl.Buffered(3) here can
                # buy a few percent; default double-buffering kept for safety.
                pl.BlockSpec((tile_m, K), lambda i: (i, 0)),
                pl.BlockSpec((K, N), lambda i: (0, 0), pipeline_mode=const_mode),
                pl.BlockSpec((3, N), lambda i: (0, 0), pipeline_mode=const_mode),
            ],
            out_specs=pl.BlockSpec((tile_m, N), lambda i: (i, 0)),
        ),
        compiler_params=pltpu.CompilerParams(
            dimension_semantics=("parallel",),
            # Headroom for later-stage shapes (K~3k, N=768, tile_m~448);
            # 64 MiB fits every generation's physical VMEM.
            vmem_limit_bytes=64 * 1024 * 1024,
        ),
    )(patches, w2d, ln_params)


# ----------------------------------------------------------------------------
# Glue: im2col (overlapping patch extraction) in plain JAX, bf16, single copy
# ----------------------------------------------------------------------------
def _im2col(x, patch, stride, pad):
    """x: (B, C, H, W) -> patches (B*Ho*Wo, patch*patch*C), Ho, Wo.

    Row feature ordering is (kh, kw, C); the conv weight is reshaped to match,
    so the stacked result is already in its final memory order (the reshape
    below is copy-free).
    """
    B, C, H, W = x.shape
    xh = jnp.transpose(x, (0, 2, 3, 1)).astype(jnp.bfloat16)        # NHWC bf16
    xp = jnp.pad(xh, ((0, 0), (pad, pad), (pad, pad), (0, 0)))
    Ho = (H + 2 * pad - patch) // stride + 1
    Wo = (W + 2 * pad - patch) // stride + 1

    cols = []
    for kh in range(patch):
        for kw in range(patch):
            sl = xp[:,
                    kh:kh + stride * (Ho - 1) + 1:stride,
                    kw:kw + stride * (Wo - 1) + 1:stride,
                    :]                                              # (B,Ho,Wo,C)
            cols.append(sl)
    p = jnp.stack(cols, axis=3)                                     # (B,Ho,Wo,P*P,C)
    return p.reshape(B * Ho * Wo, patch * patch * C), Ho, Wo


# ----------------------------------------------------------------------------
# Forward (jitted on (params, x); config is static)
# ----------------------------------------------------------------------------
@functools.partial(jax.jit,
                   static_argnames=("patch_size", "stride", "pad", "out_dtype"))
def _forward(params, x, *, patch_size, stride, pad, out_dtype):
    B = x.shape[0]
    N = params["conv_w"].shape[0]

    patches, Ho, Wo = _im2col(x, patch_size, stride, pad)           # (M, K) bf16
    M, K = patches.shape

    # (N, C, kh, kw) -> (kh, kw, C, N) -> (K, N), matching the patch ordering.
    w2d = params["conv_w"].transpose(2, 3, 1, 0).reshape(K, N).astype(jnp.bfloat16)
    ln_params = jnp.stack(
        [params["conv_b"], params["ln_gamma"], params["ln_beta"]], axis=0
    ).astype(jnp.float32)                                           # (3, N)

    tile_m = _choose_tile_m(M, _max_tile_m())
    out = _fused_proj_norm(patches, w2d, ln_params,
                           tile_m=tile_m, out_dtype=out_dtype)      # (M, N)
    return out.reshape(B, Ho * Wo, N)


# ----------------------------------------------------------------------------
# Module: OverlapPatchEmbed (Conv2d proj + LayerNorm)
# ----------------------------------------------------------------------------
class OverlapPatchEmbed:
    def __init__(self, patch_size=7, stride=4, in_channels=3, embed_dim=768,
                 out_dtype=jnp.bfloat16, key=jax.random.PRNGKey(0)):
        self.patch_size = patch_size
        self.stride = stride
        self.pad = patch_size // 2
        self.in_channels = in_channels
        self.embed_dim = embed_dim
        self.out_dtype = out_dtype

        kw, kb = jax.random.split(key, 2)
        fan_in = in_channels * patch_size * patch_size
        bound = 1.0 / (fan_in ** 0.5)
        # nn.Conv2d-style deterministic init (uniform in [-bound, bound]).
        # Params live in a pytree passed to the jitted forward (not baked in
        # as jit constants), so they can be updated between calls.
        self.params = {
            "conv_w": jax.random.uniform(
                kw, (embed_dim, in_channels, patch_size, patch_size),
                minval=-bound, maxval=bound, dtype=jnp.float32),
            "conv_b": jax.random.uniform(
                kb, (embed_dim,), minval=-bound, maxval=bound, dtype=jnp.float32),
            "ln_gamma": jnp.ones((embed_dim,), jnp.float32),
            "ln_beta": jnp.zeros((embed_dim,), jnp.float32),
        }

    def __call__(self, x):
        _, _, H, W = x.shape
        Ho = (H + 2 * self.pad - self.patch_size) // self.stride + 1
        Wo = (W + 2 * self.pad - self.patch_size) // self.stride + 1
        out = _forward(self.params, x,
                       patch_size=self.patch_size, stride=self.stride,
                       pad=self.pad, out_dtype=self.out_dtype)
        return out, Ho, Wo


# ----------------------------------------------------------------------------
# Pure-JAX reference (matched precision: inputs quantized to bf16, math in f32)
# ----------------------------------------------------------------------------
def _reference(params, x, patch_size, stride, pad):
    xq = x.astype(jnp.bfloat16).astype(jnp.float32)
    wq = params["conv_w"].astype(jnp.bfloat16).astype(jnp.float32)
    y = jax.lax.conv_general_dilated(
        xq, wq, window_strides=(stride, stride),
        padding=((pad, pad), (pad, pad)),
        dimension_numbers=("NCHW", "OIHW", "NCHW"))
    y = y + params["conv_b"][None, :, None, None]
    B, C, H, W = y.shape
    y = y.reshape(B, C, H * W).transpose(0, 2, 1)  # (B, HW, C)
    mean = y.mean(-1, keepdims=True)
    var = ((y - mean) ** 2).mean(-1, keepdims=True)
    y = (y - mean) / jnp.sqrt(var + LN_EPS)
    y = y * params["ln_gamma"] + params["ln_beta"]
    return y, H, W


if __name__ == "__main__":
    key = jax.random.PRNGKey(0)
    k_x, k_p = jax.random.split(key)

    # Small shapes: batch=2, in_channels=4, spatial=16x16, embed_dim=32.
    B, C, H, W = 2, 4, 16, 16
    embed_dim = 32
    x = jax.random.normal(k_x, (B, C, H, W), dtype=jnp.float32)

    module = OverlapPatchEmbed(patch_size=7, stride=4, in_channels=C,
                               embed_dim=embed_dim, key=k_p)

    out, Ho, Wo = module(x)
    out = jax.block_until_ready(out)

    ref, Hr, Wr = _reference(module.params, x, module.patch_size,
                             module.stride, module.pad)
    assert (Ho, Wo) == (Hr, Wr)
    assert out.shape == (B, Ho * Wo, embed_dim)
    assert out.dtype == module.out_dtype
    # bf16-matched reference; remaining diff = f32 accumulation order + the
    # final bf16 output cast.
    assert jnp.allclose(out.astype(jnp.float32), ref, atol=2e-2, rtol=2e-2)

    print("KERNEL_OK")
</pallas_src>

<mosaic_0001>
module attributes {stable_mosaic.version = 11 : i64} {
  func.func @_patch_embed_kernel(%arg0: i32, %arg1: memref<16x196xbf16, #tpu.memory_space<vmem>>, %arg2: memref<196x32xbf16, #tpu.memory_space<vmem>>, %arg3: memref<3x32xf32, #tpu.memory_space<vmem>>, %arg4: memref<16x32xbf16, #tpu.memory_space<vmem>>) attributes {dimension_semantics = [#tpu.dimension_semantics<parallel>], iteration_bounds = array<i64: 2>, scalar_prefetch = 0 : i64, scratch_operands = 0 : i64, tpu.core_type = #tpu.core_type<tc>, window_params = [{transform_indices = @transform_0, window_bounds = array<i64: 16, 196>}, {pipeline_mode = #tpu.pipeline_mode<synchronous>, transform_indices = @transform_1, window_bounds = array<i64: 196, 32>}, {pipeline_mode = #tpu.pipeline_mode<synchronous>, transform_indices = @transform_2, window_bounds = array<i64: 3, 32>}, {transform_indices = @transform_3, window_bounds = array<i64: 16, 32>}]} {
    %c0 = arith.constant 0 : index
    %c0_0 = arith.constant 0 : index
    %0 = vector.load %arg3[%c0, %c0_0] : memref<3x32xf32, #tpu.memory_space<vmem>>, vector<3x32xf32>
    %c0_1 = arith.constant 0 : index
    %c0_2 = arith.constant 0 : index
    %1 = vector.load %arg1[%c0_1, %c0_2] : memref<16x196xbf16, #tpu.memory_space<vmem>>, vector<16x196xbf16>
    %c0_3 = arith.constant 0 : index
    %c0_4 = arith.constant 0 : index
    %2 = vector.load %arg2[%c0_3, %c0_4] : memref<196x32xbf16, #tpu.memory_space<vmem>>, vector<196x32xbf16>
    %cst = arith.constant dense<0.000000e+00> : vector<16x32xf32>
    %3 = tpu.matmul %1, %2, %cst {dimension_numbers = #tpu.dot_dimension_numbers<[1], [0], [0], [1], [0, 0, 1, 1], [], []>} : vector<16x196xbf16>, vector<196x32xbf16>, vector<16x32xf32> -> vector<16x32xf32>
    %4 = vector.extract_strided_slice %0 {offsets = [0, 0], sizes = [1, 32], strides = [1, 1]} : vector<3x32xf32> to vector<1x32xf32>
    %5 = vector.broadcast %4 : vector<1x32xf32> to vector<16x32xf32>
    %6 = arith.addf %3, %5 : vector<16x32xf32>
    %cst_5 = arith.constant dense<0.000000e+00> : vector<16xf32>
    %7 = vector.multi_reduction <add>, %6, %cst_5 [1] : vector<16x32xf32> to vector<16xf32>
    %8 = vector.shape_cast %7 : vector<16xf32> to vector<16x1xf32>
    %9 = arith.mulf %6, %6 : vector<16x32xf32>
    %cst_6 = arith.constant dense<0.000000e+00> : vector<16xf32>
    %10 = vector.multi_reduction <add>, %9, %cst_6 [1] : vector<16x32xf32> to vector<16xf32>
    %11 = vector.shape_cast %10 : vector<16xf32> to vector<16x1xf32>
    %cst_7 = arith.constant 3.125000e-02 : f32
    %12 = vector.broadcast %cst_7 : f32 to vector<16x1xf32>
    %13 = arith.mulf %8, %12 : vector<16x1xf32>
    %cst_8 = arith.constant 3.125000e-02 : f32
    %14 = vector.broadcast %cst_8 : f32 to vector<16x1xf32>
    %15 = arith.mulf %11, %14 : vector<16x1xf32>
    %16 = arith.mulf %13, %13 : vector<16x1xf32>
    %17 = arith.subf %15, %16 : vector<16x1xf32>
    %cst_9 = arith.constant 0.000000e+00 : f32
    %18 = vector.broadcast %cst_9 : f32 to vector<16x1xf32>
    %19 = arith.maximumf %17, %18 : vector<16x1xf32>
    %20 = vector.broadcast %13 : vector<16x1xf32> to vector<16x32xf32>
    %21 = arith.subf %6, %20 : vector<16x32xf32>
    %cst_10 = arith.constant 9.99999974E-6 : f32
    %22 = vector.broadcast %cst_10 : f32 to vector<16x1xf32>
    %23 = arith.addf %19, %22 : vector<16x1xf32>
    %24 = math.rsqrt %23 : vector<16x1xf32>
    %25 = vector.broadcast %24 : vector<16x1xf32> to vector<16x32xf32>
    %26 = arith.mulf %21, %25 : vector<16x32xf32>
    %27 = vector.extract_strided_slice %0 {offsets = [1, 0], sizes = [1, 32], strides = [1, 1]} : vector<3x32xf32> to vector<1x32xf32>
    %28 = vector.broadcast %27 : vector<1x32xf32> to vector<16x32xf32>
    %29 = arith.mulf %26, %28 : vector<16x32xf32>
    %30 = vector.extract_strided_slice %0 {offsets = [2, 0], sizes = [1, 32], strides = [1, 1]} : vector<3x32xf32> to vector<1x32xf32>
    %31 = vector.broadcast %30 : vector<1x32xf32> to vector<16x32xf32>
    %32 = arith.addf %29, %31 : vector<16x32xf32>
    %33 = arith.truncf %32 : vector<16x32xf32> to vector<16x32xbf16>
    %c0_11 = arith.constant 0 : index
    %c0_12 = arith.constant 0 : index
    %34 = vector.load %arg4[%c0_11, %c0_12] : memref<16x32xbf16, #tpu.memory_space<vmem>>, vector<16x32xbf16>
    tpu.vector_store %arg4[%c0_11, %c0_12], %33 {strides = array<i32>} : memref<16x32xbf16, #tpu.memory_space<vmem>>, vector<16x32xbf16>,
    return
  }
  func.func @transform_0(%arg0: i32) -> (i32, i32) {
    %c0_i32 = arith.constant 0 : i32
    %c0_i32_0 = arith.constant 0 : i32
    return %arg0, %c0_i32 : i32, i32
  }
  func.func @transform_1(%arg0: i32) -> (i32, i32) {
    %c0_i32 = arith.constant 0 : i32
    %c0_i32_0 = arith.constant 0 : i32
    %c0_i32_1 = arith.constant 0 : i32
    return %c0_i32, %c0_i32_0 : i32, i32
  }
  func.func @transform_2(%arg0: i32) -> (i32, i32) {
    %c0_i32 = arith.constant 0 : i32
    %c0_i32_0 = arith.constant 0 : i32
    %c0_i32_1 = arith.constant 0 : i32
    return %c0_i32, %c0_i32_0 : i32, i32
  }
  func.func @transform_3(%arg0: i32) -> (i32, i32) {
    %c0_i32 = arith.constant 0 : i32
    %c0_i32_0 = arith.constant 0 : i32
    return %arg0, %c0_i32 : i32, i32
  }
}

</mosaic_0001>

<bundles_post_ra>
// kernel: _forward.1
= control target key start
LH: loop header
LB: loop body
LE: loop exit
PB: predicated region body
PF: predicated region fallthrough
CT: control target
= control target key end

     0   :  { %8 = vsyncpa [#allocation3], 0  ;;  %s819_s0 = inlined_call_operand.vmem [shape: bf16[32,196], index: 0, kind: input, shape index: {}]   ;;  %s820_s1 = inlined_call_operand.vmem [shape: bf16[196,32], index: 1, kind: input, shape index: {}]   ;;  %s821_s2 = inlined_call_operand.vmem [shape: f32[3,32], index: 2, kind: input, shape index: {}]   ;;  %s822_s3 = inlined_call_operand.hbm [shape: bf16[32,32], index: 3, kind: output, shape index: {}]  }
   0x1   :  { %10 = vsyncpa [#allocation3 + $0x1], 0  ;;  %s682_s12 = smov 0   ;;  %s684_s13 = smov 0  }
   0x2   :  { %s686_s14 = smov 0   ;;  %s688_s15 = smov 0  }
   0x3 LB: > { %s703_s16 = sadd.s32 4294967295, %s658_s15   ;;  %s465_s17 = sadd.s32 4294967294, %s658_s15   ;;  %s658_s15 = sphi %s688_s15, %s828_s15   ;;  %s654_s14 = sphi %s686_s14, %s827_s14   ;;  %s650_s13 = sphi %s684_s13, %s826_s13   ;;  %s646_s12 = sphi %s682_s12, %s825_s12  }
   0x4   : > { %s707_s18 = sadd.s32 1, %s658_s15   ;;  %s91_s19 = sadd.s32 1, %s654_s14 }
   0x5   : > { %s88_s20 = ssub.s32 %s658_s15, %s707_s18  ;;  %p101_p0 = scmp.ne.s32.totalorder %s654_s14, %s650_s13 }
   0x6   : > { %p89_p1 = scmp.eq.s32.totalorder %s88_s20, 0  ;;  %p102_p2 = scmp.eq.s32.totalorder %s703_s16, 1 }
   0x7   : > { %p107_p3 = scmp.ne.s32.totalorder %s650_s13, %s646_s12  ;;  %p108_p4 = scmp.eq.s32.totalorder %s465_s17, 1 }
   0x8   : > { %s718_s21 = scalar_select %p89_p1, %s654_s14, %s91_s19  }
   0x9   : > { %p720_p5 = por %p102_p2, %p101_p0  ;;  %p724_p6 = por %p108_p4, %p107_p3 }
   0xa   : > { %p468_p7 = scmp.ge.s32.totalorder %s658_s15, 1  ;;  %p142_p8 = scmp.lt.s32.totalorder %s658_s15, 3 }
   0xc   : > { %p143_p9 = pnand %p468_p7, %p142_p8 }
   0xd   : > { %s470_s28 = sshll.u32 (!%p143_p9), %s703_s16, 1  ;;  %s550_s20 = sshll.u32 (!%p143_p9), %s703_s16, 3 }
   0xe   : > { %146 = sbr.rel (%p143_p9) target bundleno = 346 (0x15a), region = 32  ;;  %p168_p10 = scmp.lt.s32.totalorder (!%p143_p9), %s470_s28, 3 }
   0xf   : > { %s399_s27 = scalar_lea.hbm (!%p143_p9), %s822_s3, %s550_s20  ;;  %s616_s7 = scalar_lea.hbm (!%p143_p9), %s822_s3, 16 }
  0x10   : > { %s402_s30 = sshll.u32 (!%p143_p9), %s399_s27, 4  ;;  %s403_s30 = int_to_ptr.hbm [resolvable:$true] %s402_s30 }
  0x11   : > { %s610_s4 = sshra.s32 (!%p143_p9), %s403_s30, 4  ;;  %s611_s4 = int_to_ptr.hbm [resolvable:$true] %s610_s4 }
  0x12   : > { %p617_p0 = scmp.lt.s32.totalorder (!%p143_p9), %s611_s4, %s822_s3 }
  0x13   : > { %v545_v0 = vld [vmem:[%s820_s1 + $0x38] sm:$0xff]  ;;  %v203_v1 = vld [vmem:[%s820_s1 + $0x60] sm:$0x3]  ;;  %v544_v3 = vld [vmem:[%s820_s1 + $0x30] sm:$0xff]  ;;  %vm293_vm0 = vcmask 1041408   ;;  %s830_s28 = smov (!%p168_p10, %s470_s28), 3 }
  0x14   : > { %v263_v2 = vunpack.c.l.b16 %v203_v1  ;;  %297 = vmatpush.bf16.msra.mxu0 %v545_v0  ;;  %v543_v6 = vld [vmem:[%s820_s1 + $0x28] sm:$0xff]  ;;  %v549_v7 = vld [vmem:[%s820_s1 + $0x58] sm:$0xff]  ;;  %v542_v8 = vld [vmem:[%s820_s1 + $0x20] sm:$0xff]  ;;  %s535_s17 = sshll.u32 %s830_s28, 3  ;;  %vm289_vm1 = vcmask 556032   ;;  %vm325_vm2 = vcmask 261120  }
  0x15   : > { %v548_v9 = vld [vmem:[%s820_s1 + $0x50] sm:$0xff]  ;;  %v541_v10 = vld [vmem:[%s820_s1 + $0x18] sm:$0xff]  ;;  %v547_v11 = vld [vmem:[%s820_s1 + $0x48] sm:$0xff]  ;;  %s172_s29 = scalar_lea.vmem %s819_s0, %s535_s17  ;;  %s164_s17 = sand.u32 1, %s650_s13   ;;  %vm384_vm7 = vcmask 257024  }
  0x16   : > { %v276_v4 = vpack.c.b16 %v263_v2, %v263_v2  ;;  %v540_v12 = vld [vmem:[%s820_s1 + $0x10] sm:$0xff]  ;;  %v546_v13 = vld [vmem:[%s820_s1 + $0x40] sm:$0xff]  ;;  %v477_v15 = vld [vmem:[%s172_s29 + $0x8] sm:$0xf0]  ;;  %s469_s19 = sshll.u32 %s164_s17, 3  ;;  %s388_s16 = scalar_lea.sflag [#allocation3], %s164_s17 }
  0x17   : > { %v536_v14 = vld [vmem:[%s172_s29 + $0x4] sm:$0xf]  ;;  %v539_v17 = vld [vmem:[%s820_s1 + $0x8] sm:$0xff]  ;;  %v475_v19 = vld [vmem:[%s172_s29] sm:$0xf]  ;;  %s166_s24 = scalar_lea.vmem [#allocation2], %s469_s19 }
  0x18   : > { %v295_v5 = vsel %vm293_vm0, %v276_v4, 0  ;;  %298 = vmatpush.bf16.msra.mxu0 %v544_v3  ;;  %v480_v16 = vor.u32 %v536_v14, %v477_v15  ;;  %v538_v18 = vld [vmem:[%s820_s1] sm:$0xff]  ;;  %v537_v20 = vld [vmem:[%s172_s29 + $0x4] sm:$0xf0]  ;;  %s400_s29 = sshll.u32 %s166_s24, 4  ;;  %s612_s28 = scalar_lea.hbm %s611_s4, 8  ;;  %s401_s29 = int_to_ptr.vmem [resolvable:$true] %s400_s29 }
  0x19   : > { %314 = vmatpush.bf16.msra.mxu1 %v295_v5  ;;  %v476_v21 = vor.u32 %v537_v20, %v475_v19  ;;  %v776_v22 = vld [vmem:[%s821_s2] sm:$0x7]  ;;  %p613_p11 = scmp.ne.s32.totalorder %s611_s4, %s612_s28  ;;  %p618_p1 = scmp.lt.s32.totalorder %s616_s7, %s612_s28 }
  0x1a   : > { %v204_v23 = vperm.slane %v776_v22, 0  ;;  %v376_v61 = vperm.slane %v776_v22, 1  ;;  %v379_v1 = vperm.slane %v776_v22, 2 }
  0x1b   : > { %p614_p12 = pnand %p613_p11, %p720_p5  ;;  %p619_p2 = por %p618_p1, %p617_p0 }
  0x1c   : > { %299 = vmatpush.bf16.msra.mxu0 %v543_v6 }
  0x1d   : > { %315 = vmatpush.bf16.msra.mxu1 %v549_v7  ;;  %p615_p13 = pneg %p614_p12 }
  0x1f   : > { %p620_p3 = pnand %p619_p2, %p615_p13 }
  0x20   : > { %300 = vmatpush.bf16.msra.mxu0 %v542_v8 }
  0x21   : > { %316 = vmatpush.bf16.msra.mxu1 %v548_v9 }
  0x24   : > { %301 = vmatpush.bf16.msra.mxu0 %v541_v10 }
  0x25   : > { %317 = vmatpush.bf16.msra.mxu1 %v547_v11 }
  0x28   : > { %302 = vmatpush.bf16.msra.mxu0 %v540_v12 }
  0x29   : > { %318 = vmatpush.bf16.msra.mxu1 %v546_v13 }
  0x2c   : > { %529 = vmatmul.msk.bf16.vlgmr.msra.gmra.mxu1 %vm289_vm1, %v480_v16  ;;  %303 = vmatpush.bf16.msra.mxu0 %v539_v17 }
  0x30   : > { %304 = vmatpush.bf16.msra.mxu0 %v538_v18 }
  0x33   : > { %305 = vmatmul.bf16.vlgmr.msra.gmra.mxu0 %v476_v21 }
  0xa9   : > { %v320_v24 = vpop.f32.mrf.mxu1 }
  0xb0   : > { %v306_v25 = vpop.f32.mrf.mxu0 }
  0xb1   : > { %v307_v26 = vadd.f32 %v306_v25, %v204_v23  ;;  %v322_v33 = vpop.f32.mrf.mxu1 }
  0xb3   : > { %v321_v27 = vadd.f32 %v320_v24, %v307_v26 }
  0xb5   : > { %v326_v28 = vsel %vm325_vm2, %v321_v27, 0.0  ;;  %v332_v29 = vmul.f32 %v321_v27, %v321_v27 }
  0xb6   : > { %327 = vadd.xlane.f32.xlu0 %v326_v28 }
  0xb7   : > { %v334_v30 = vsel %vm325_vm2, %v332_v29, 0.0 }
  0xb8   : > { %v308_v31 = vpop.f32.mrf.mxu0  ;;  %335 = vadd.xlane.f32.xlu1 %v334_v30 }
  0xb9   : > { %v309_v32 = vadd.f32 %v308_v31, %v204_v23 }
  0xbb   : > { %v323_v34 = vadd.f32 %v322_v33, %v309_v32 }
  0xbd   : > { %v329_v35 = vsel %vm325_vm2, %v323_v34, 0.0  ;;  %v333_v36 = vmul.f32 %v323_v34, %v323_v34 }
  0xbe   : > { %330 = vadd.xlane.f32.xlu0 %v329_v35 }
  0xbf   : > { %v337_v37 = vsel %vm325_vm2, %v333_v36, 0.0 }
  0xc0   : > { %338 = vadd.xlane.f32.xlu1 %v337_v37 }
 0x129   : > { %v328_v38 = vpop.xlane.xlu0 %327 }
 0x12a   : > { %v340_v39 = vmul.f32 0.03125, %v328_v38 }
 0x12b   : > { %v336_v40 = vpop.xlane.xlu1 %335 }
 0x12c   : > { %v344_v41 = vmul.f32 %v340_v39, %v340_v39  ;;  %v342_v42 = vmul.f32 0.03125, %v336_v40  ;;  %v350_v62 = vsub.f32 %v321_v27, %v340_v39 }
 0x12e   : > { %v346_v43 = vsub.f32 %v342_v42, %v344_v41 }
 0x130   : > { %v348_v44 = vmax.f32 %v346_v43, 0.0 }
 0x131   : > { %v331_v45 = vpop.xlane.xlu0 %330 }
 0x132   : > { %v352_v46 = vadd.f32 1e-05, %v348_v44  ;;  %v341_v47 = vmul.f32 0.03125, %v331_v45 }
 0x133   : > { %v339_v48 = vpop.xlane.xlu1 %338 }
 0x134   : > { %592 = vrsqrt.f32 %v352_v46  ;;  %v345_v49 = vmul.f32 %v341_v47, %v341_v47  ;;  %v343_v50 = vmul.f32 0.03125, %v339_v48  ;;  %vm360_vm4 = vweird.f32 %v352_v46 }
 0x135   : > { %v351_v10 = vsub.f32 %v323_v34, %v341_v47 }
 0x136   : > { %v347_v51 = vsub.f32 %v343_v50, %v345_v49 }
 0x138   : > { %v349_v52 = vmax.f32 %v347_v51, 0.0 }
 0x13a   : > { %v593_v53 = vpop.eup %592  ;;  %v353_v55 = vadd.f32 1e-05, %v349_v52 }
 0x13b   : > { %v355_v54 = vmul.f32 %v593_v53, %v352_v46  ;;  %vm361_vm3 = vweird.f32 %v593_v53 }
 0x13c   : > { %594 = vrsqrt.f32 %v353_v55  ;;  %vm362_vm5 = vmor %vm360_vm4, %vm361_vm3  ;;  %vm370_vm8 = vweird.f32 %v353_v55 }
 0x13d   : > { %v356_v56 = vmul.f32 %v593_v53, %v355_v54 }
 0x13f   : > { %v357_v57 = vmul.f32 0.5, %v356_v56 }
 0x141   : > { %v358_v58 = vsub.f32 1.5, %v357_v57 }
 0x142   : > { %v595_v59 = vpop.eup %594 }
 0x143   : > { %v359_v60 = vmul.f32 %v593_v53, %v358_v58  ;;  %v365_v63 = vmul.f32 %v595_v59, %v353_v55  ;;  %vm371_vm6 = vweird.f32 %v595_v59 }
 0x144   : > { %vm372_vm9 = vmor %vm370_vm8, %vm371_vm6 }
 0x145   : > { %v363_v0 = vsel %vm362_vm5, %v593_v53, %v359_v60  ;;  %v366_v3 = vmul.f32 %v595_v59, %v365_v63 }
 0x146   : > { %v374_v2 = vmul.f32 %v363_v0, %v350_v62 }
 0x147   : > { %v367_v5 = vmul.f32 0.5, %v366_v3 }
 0x148   : > { %v377_v4 = vmul.f32 %v376_v61, %v374_v2 }
 0x149   : > { %v368_v7 = vsub.f32 1.5, %v367_v5 }
 0x14a   : > { %v380_v6 = vadd.f32 %v379_v1, %v377_v4 }
 0x14b   : > { %v369_v8 = vmul.f32 %v595_v59, %v368_v7 }
 0x14c   : > { %v382_v9 = vpack.c.bf16 %v380_v6, %v380_v6 }
 0x14d   : > { %v373_v11 = vsel %vm372_vm9, %v595_v59, %v369_v8 }
 0x14e   : > { %385 = vst.msk [vmem:[%s166_s24] sm:$0xf] %vm384_vm7, %v382_v9  ;;  %v375_v12 = vmul.f32 %v373_v11, %v351_v10 }
 0x150   : > { %v378_v13 = vmul.f32 %v376_v61, %v375_v12 }
 0x152   : > { %v381_v14 = vadd.f32 %v379_v1, %v378_v13 }
 0x154   : > { %v383_v15 = vpack.c.bf16 %v381_v14, %v381_v14 }
 0x156   : > { %386 = vst.msk [vmem:[%s166_s24 + $0x4] sm:$0xf] %vm384_vm7, %v383_v15 }
 0x157   : > { %623 = shalt.err (!%p620_p3)
}
 0x158   : > { %s660_s10 = smov 64   ;;  %s661_s11 = smov 4  }
 0x159   : > { %551 = dma.vmem_to_hbm [thread:$0]  (%p720_p5), %s401_s29, 128, %s403_s30, %s388_s16, %s660_s10, %s660_s10, %s661_s11  }
 0x15a PF: > { %p557_p4 = scmp.ge.s32.totalorder %s658_s15, 2  ;;  %s417_s17 = sand.u32 1, %s646_s12  }
 0x15b   : > { %s418_s19 = scalar_lea.sflag [#allocation3], %s417_s17 }
 0x15c   : > { %p554_p7 = pnand %p557_p4, %p724_p6 }
 0x15e   : > { %p555_p8 = pneg %p554_p7 }
 0x160   : > { %641 = dma.done.wait (%p555_p8), %s418_s19, 128  }
 0x161   : > { %643 = vsyncadd (%p555_p8), %s418_s19, 4294967168  ;;  %p13_p9 = scmp.ge.s32.totalorder %s707_s18, 4   ;;  %s825_s12 = smov %s650_s13 }
 0x162   : > { %s826_s13 = smov %s654_s14  ;;  %s827_s14 = smov %s718_s21 }
 0x163   : > { %s828_s15 = smov %s707_s18  ;;  %15 = sbr.rel (!%p13_p9) target bundleno = 3 (0x3), region = 67 }
 0x168   :  { %424 = vsyncpa [#allocation3], 1 }
 0x169   :  { %426 = vsyncpa [#allocation3 + $0x1], 1 }

</bundles_post_ra>
